<compile_context>
chip_gen: v6e
topology: v6e:2x2x1
jax: 0.10.0
libtpu: 0.0.40
codegen_flags: <defaults>
</compile_context>

<pallas_src>
import functools

import jax
import jax.numpy as jnp
from jax.experimental import pallas as pl
from jax.experimental.pallas import tpu as pltpu

N_IN, N_MID, N_OUT = 784, 100, 10
LANE = 128


def _round_up(x, m):
    return ((x + m - 1) // m) * m


def _cdiv(a, b):
    return -(-a // b)


def mlp_kernel(x_ref, w1_ref, b1_ref, w2_ref, b2_ref, w3_ref, b3_ref, o_ref,
               *, n_out):
    # x tile arrives f32 straight from HBM; cast to bf16 in-kernel (VPU work,
    # hidden under the tile DMA) so the wrapper never materializes a bf16 copy.
    x = x_ref[...].astype(jnp.bfloat16)

    # Layer 1: bf16 MXU matmul, f32 accumulate; f32 epilogue (bias + ReLU).
    h1 = jnp.dot(x, w1_ref[...], preferred_element_type=jnp.float32) + b1_ref[...]
    h1 = jnp.maximum(h1, 0.0)

    # Layer 2.
    h2 = jnp.dot(h1.astype(jnp.bfloat16), w2_ref[...],
                 preferred_element_type=jnp.float32) + b2_ref[...]
    h2 = jnp.maximum(h2, 0.0)

    # Layer 3 (logits, lane-padded to 128 columns).
    logits = jnp.dot(h2.astype(jnp.bfloat16), w3_ref[...],
                     preferred_element_type=jnp.float32) + b3_ref[...]

    # Padded classes [n_out, 128) must not contribute to the softmax.
    col = jax.lax.broadcasted_iota(jnp.int32, logits.shape, dimension=1)
    valid = col < n_out
    logits = jnp.where(valid, logits, -1e30)

    # Numerically stable log_softmax over the feature axis (f32 math).
    m = jnp.max(logits, axis=-1, keepdims=True)
    shifted = logits - m
    lse = jnp.log(jnp.sum(jnp.exp(shifted), axis=-1, keepdims=True))
    out = shifted - lse

    # Zero the padded columns (so the padded buffer never holds garbage) and
    # store bf16 to halve output writeback; real classes are sliced out later.
    o_ref[...] = jnp.where(valid, out, 0.0).astype(o_ref.dtype)


def _choose_tm(batch, block_rows):
    """Row-tile size: >=16 sublanes; even grid length (>=2) for v7x megacore."""
    if batch <= 16:
        return _round_up(max(batch, 1), 16)
    steps = 2 * max(1, _cdiv(batch, 2 * block_rows))        # even, >= 2
    return min(block_rows, _round_up(_cdiv(batch, steps), 16))


@functools.partial(jax.jit, static_argnames=("n_out", "block_rows"))
def mlp_forward(x, padded_params, *, n_out=N_OUT, block_rows=1024):
    """x: any shape whose trailing dims flatten to n_in (e.g. NCHW images)."""
    w1, b1, w2, b2, w3, b3 = padded_params
    n_in = w1.shape[0]
    n_out_pad = w3.shape[1]

    x2 = x.reshape(-1, n_in).astype(jnp.float32)             # == x.view(-1, n_in)
    batch = x2.shape[0]

    tm = _choose_tm(batch, block_rows)
    grid_len = _cdiv(batch, tm)
    batch_pad = grid_len * tm
    if batch_pad != batch:
        x2 = jnp.pad(x2, ((0, batch_pad - batch), (0, 0)))

    flops = 2 * batch_pad * (n_in * w1.shape[1]
                             + w2.shape[0] * w2.shape[1]
                             + w3.shape[0] * w3.shape[1])
    bytes_accessed = (batch_pad * n_in * 4                    # f32 x stream
                      + (w1.size + w2.size + w3.size) * 2     # bf16 weights
                      + (b1.size + b2.size + b3.size) * 4     # f32 biases
                      + batch_pad * n_out_pad * 2)            # bf16 output
    cost = pl.CostEstimate(flops=flops,
                           transcendentals=batch_pad * n_out_pad,
                           bytes_accessed=bytes_accessed)

    out = pl.pallas_call(
        functools.partial(mlp_kernel, n_out=n_out),
        out_shape=jax.ShapeDtypeStruct((batch_pad, n_out_pad), jnp.bfloat16),
        grid_spec=pltpu.PrefetchScalarGridSpec(
            num_scalar_prefetch=0,
            grid=(grid_len,),
            in_specs=[
                pl.BlockSpec((tm, n_in), lambda i: (i, 0)),   # f32 x tile
                pl.BlockSpec(w1.shape, lambda i: (0, 0)),     # VMEM-resident
                pl.BlockSpec(b1.shape, lambda i: (0, 0)),
                pl.BlockSpec(w2.shape, lambda i: (0, 0)),
                pl.BlockSpec(b2.shape, lambda i: (0, 0)),
                pl.BlockSpec(w3.shape, lambda i: (0, 0)),
                pl.BlockSpec(b3.shape, lambda i: (0, 0)),
            ],
            out_specs=pl.BlockSpec((tm, n_out_pad), lambda i: (i, 0)),
        ),
        compiler_params=pltpu.CompilerParams(
            dimension_semantics=("parallel",),    # megacore / v7x 2-TC sharding
        ),
        cost_estimate=cost,
    )(x2, w1, b1, w2, b2, w3, b3)

    # Strip batch padding and lane padding of the class dimension; return f32
    # to match the PyTorch module's output dtype.
    return out[:batch, :n_out].astype(jnp.float32)


def init_params(key, n_in=N_IN, n_mid=N_MID, n_out=N_OUT):
    """Deterministic synthetic init (PyTorch-Linear-like uniform bounds), f32."""
    ks = jax.random.split(key, 6)

    def linear(kw, kb, fan_in, fan_out):
        bound = 1.0 / (fan_in ** 0.5)
        w = jax.random.uniform(kw, (fan_in, fan_out), jnp.float32, -bound, bound)
        b = jax.random.uniform(kb, (1, fan_out), jnp.float32, -bound, bound)
        return w, b

    w1, b1 = linear(ks[0], ks[1], n_in, n_mid)
    w2, b2 = linear(ks[2], ks[3], n_mid, n_mid)
    w3, b3 = linear(ks[4], ks[5], n_mid, n_out)
    return (w1, b1, w2, b2, w3, b3)


def pad_params(params, lane=LANE):
    """One-time cost: zero-pad feature dims to lane multiples, cast W to bf16."""
    w1, b1, w2, b2, w3, b3 = params
    n_mid_p = _round_up(w1.shape[1], lane)
    n_out_p = _round_up(w3.shape[1], lane)

    def pad_w(w, rows_to, cols_to):
        r, c = w.shape
        return jnp.pad(w, ((0, rows_to - r), (0, cols_to - c))).astype(jnp.bfloat16)

    def pad_b(b, cols_to):
        return jnp.pad(b, ((0, 0), (0, cols_to - b.shape[1]))).astype(jnp.float32)

    return (pad_w(w1, w1.shape[0], n_mid_p), pad_b(b1, n_mid_p),
            pad_w(w2, n_mid_p, n_mid_p),     pad_b(b2, n_mid_p),
            pad_w(w3, n_mid_p, n_out_p),     pad_b(b3, n_out_p))


def mlp_reference_f32(x, params):
    """Plain-JAX f32 reference (exact PyTorch semantics)."""
    w1, b1, w2, b2, w3, b3 = params
    x2 = x.reshape(-1, w1.shape[0]).astype(jnp.float32)
    h1 = jnp.maximum(x2 @ w1 + b1, 0.0)
    h2 = jnp.maximum(h1 @ w2 + b2, 0.0)
    logits = h2 @ w3 + b3
    return jax.nn.log_softmax(logits, axis=1)


def mlp_reference_bf16(x, params):
    """Plain-JAX reference using the same bf16-matmul / f32-accumulate recipe."""
    w1, b1, w2, b2, w3, b3 = params

    def mm(a, w):
        return jnp.dot(a.astype(jnp.bfloat16), w.astype(jnp.bfloat16),
                       preferred_element_type=jnp.float32)

    x2 = x.reshape(-1, w1.shape[0]).astype(jnp.float32)
    h1 = jnp.maximum(mm(x2, w1) + b1, 0.0)
    h2 = jnp.maximum(mm(h1, w2) + b2, 0.0)
    logits = mm(h2, w3) + b3
    return jax.nn.log_softmax(logits, axis=1)


if __name__ == "__main__":
    key = jax.random.PRNGKey(0)
    k_x, k_x2, k_p = jax.random.split(key, 3)

    params = init_params(k_p)
    padded = pad_params(params)

    # MNIST-like input: NCHW (batch=8, 1, 28, 28) -> flattened to (8, 784).
    x = jax.random.normal(k_x, (8, 1, 28, 28), dtype=jnp.float32)
    out = jax.block_until_ready(mlp_forward(x, padded))
    assert out.shape == (8, N_OUT)
    # Tolerances account for bf16 matmul inputs + bf16 output store.
    assert jnp.allclose(out, mlp_reference_bf16(x, params), atol=2e-2, rtol=2e-2)
    assert jnp.allclose(out, mlp_reference_f32(x, params), atol=5e-2, rtol=5e-2)

    # Larger batch exercises the gridded path (even grid length >= 2).
    x_big = jax.random.normal(k_x2, (256, 1, 28, 28), dtype=jnp.float32)
    out_big = jax.block_until_ready(mlp_forward(x_big, padded))
    assert out_big.shape == (256, N_OUT)
    assert jnp.allclose(out_big, mlp_reference_bf16(x_big, params),
                        atol=2e-2, rtol=2e-2)
    assert jnp.allclose(out_big, mlp_reference_f32(x_big, params),
                        atol=5e-2, rtol=5e-2)

    print("KERNEL_OK")
</pallas_src>

<mosaic_0001>
module attributes {stable_mosaic.version = 11 : i64} {
  func.func @mlp_kernel(%arg0: i32, %arg1: memref<16x784xf32, #tpu.memory_space<vmem>>, %arg2: memref<784x128xbf16, #tpu.memory_space<vmem>>, %arg3: memref<1x128xf32, #tpu.memory_space<vmem>>, %arg4: memref<128x128xbf16, #tpu.memory_space<vmem>>, %arg5: memref<1x128xf32, #tpu.memory_space<vmem>>, %arg6: memref<128x128xbf16, #tpu.memory_space<vmem>>, %arg7: memref<1x128xf32, #tpu.memory_space<vmem>>, %arg8: memref<16x128xbf16, #tpu.memory_space<vmem>>) attributes {dimension_semantics = [#tpu.dimension_semantics<parallel>], iteration_bounds = array<i64: 1>, scalar_prefetch = 0 : i64, scratch_operands = 0 : i64, tpu.core_type = #tpu.core_type<tc>, window_params = [{transform_indices = @transform_0, window_bounds = array<i64: 16, 784>}, {pipeline_mode = #tpu.pipeline_mode<synchronous>, transform_indices = @transform_1, window_bounds = array<i64: 784, 128>}, {pipeline_mode = #tpu.pipeline_mode<synchronous>, transform_indices = @transform_2, window_bounds = array<i64: 1, 128>}, {pipeline_mode = #tpu.pipeline_mode<synchronous>, transform_indices = @transform_3, window_bounds = array<i64: 128, 128>}, {pipeline_mode = #tpu.pipeline_mode<synchronous>, transform_indices = @transform_4, window_bounds = array<i64: 1, 128>}, {pipeline_mode = #tpu.pipeline_mode<synchronous>, transform_indices = @transform_5, window_bounds = array<i64: 128, 128>}, {pipeline_mode = #tpu.pipeline_mode<synchronous>, transform_indices = @transform_6, window_bounds = array<i64: 1, 128>}, {transform_indices = @transform_7, window_bounds = array<i64: 16, 128>}]} {
    %c0 = arith.constant 0 : index
    %c0_0 = arith.constant 0 : index
    %0 = vector.load %arg1[%c0, %c0_0] : memref<16x784xf32, #tpu.memory_space<vmem>>, vector<16x784xf32>
    %1 = arith.truncf %0 : vector<16x784xf32> to vector<16x784xbf16>
    %c0_1 = arith.constant 0 : index
    %c0_2 = arith.constant 0 : index
    %2 = vector.load %arg2[%c0_1, %c0_2] : memref<784x128xbf16, #tpu.memory_space<vmem>>, vector<784x128xbf16>
    %cst = arith.constant dense<0.000000e+00> : vector<16x128xf32>
    %3 = tpu.matmul %1, %2, %cst {dimension_numbers = #tpu.dot_dimension_numbers<[1], [0], [0], [1], [0, 0, 1, 1], [], []>} : vector<16x784xbf16>, vector<784x128xbf16>, vector<16x128xf32> -> vector<16x128xf32>
    %c0_3 = arith.constant 0 : index
    %c0_4 = arith.constant 0 : index
    %4 = vector.load %arg3[%c0_3, %c0_4] : memref<1x128xf32, #tpu.memory_space<vmem>>, vector<1x128xf32>
    %5 = vector.broadcast %4 : vector<1x128xf32> to vector<16x128xf32>
    %6 = arith.addf %3, %5 : vector<16x128xf32>
    %cst_5 = arith.constant 0.000000e+00 : f32
    %7 = vector.broadcast %cst_5 : f32 to vector<16x128xf32>
    %8 = arith.maximumf %6, %7 : vector<16x128xf32>
    %9 = arith.truncf %8 : vector<16x128xf32> to vector<16x128xbf16>
    %c0_6 = arith.constant 0 : index
    %c0_7 = arith.constant 0 : index
    %10 = vector.load %arg4[%c0_6, %c0_7] : memref<128x128xbf16, #tpu.memory_space<vmem>>, vector<128x128xbf16>
    %cst_8 = arith.constant dense<0.000000e+00> : vector<16x128xf32>
    %11 = tpu.matmul %9, %10, %cst_8 {dimension_numbers = #tpu.dot_dimension_numbers<[1], [0], [0], [1], [0, 0, 1, 1], [], []>} : vector<16x128xbf16>, vector<128x128xbf16>, vector<16x128xf32> -> vector<16x128xf32>
    %c0_9 = arith.constant 0 : index
    %c0_10 = arith.constant 0 : index
    %12 = vector.load %arg5[%c0_9, %c0_10] : memref<1x128xf32, #tpu.memory_space<vmem>>, vector<1x128xf32>
    %13 = vector.broadcast %12 : vector<1x128xf32> to vector<16x128xf32>
    %14 = arith.addf %11, %13 : vector<16x128xf32>
    %cst_11 = arith.constant 0.000000e+00 : f32
    %15 = vector.broadcast %cst_11 : f32 to vector<16x128xf32>
    %16 = arith.maximumf %14, %15 : vector<16x128xf32>
    %17 = arith.truncf %16 : vector<16x128xf32> to vector<16x128xbf16>
    %c0_12 = arith.constant 0 : index
    %c0_13 = arith.constant 0 : index
    %18 = vector.load %arg6[%c0_12, %c0_13] : memref<128x128xbf16, #tpu.memory_space<vmem>>, vector<128x128xbf16>
    %cst_14 = arith.constant dense<0.000000e+00> : vector<16x128xf32>
    %19 = tpu.matmul %17, %18, %cst_14 {dimension_numbers = #tpu.dot_dimension_numbers<[1], [0], [0], [1], [0, 0, 1, 1], [], []>} : vector<16x128xbf16>, vector<128x128xbf16>, vector<16x128xf32> -> vector<16x128xf32>
    %c0_15 = arith.constant 0 : index
    %c0_16 = arith.constant 0 : index
    %20 = vector.load %arg7[%c0_15, %c0_16] : memref<1x128xf32, #tpu.memory_space<vmem>>, vector<1x128xf32>
    %21 = vector.broadcast %20 : vector<1x128xf32> to vector<16x128xf32>
    %22 = arith.addf %19, %21 : vector<16x128xf32>
    %23 = tpu.iota {dimensions = array<i32: 1>} : vector<16x128xi32>
    %c10_i32 = arith.constant 10 : i32
    %24 = vector.broadcast %c10_i32 : i32 to vector<16x128xi32>
    %25 = arith.cmpi slt, %23, %24 : vector<16x128xi32>
    %cst_17 = arith.constant -1.000000e+30 : f32
    %26 = vector.broadcast %cst_17 : f32 to vector<16x128xf32>
    %27 = arith.select %25, %22, %26 : vector<16x128xi1>, vector<16x128xf32>
    %cst_18 = arith.constant dense<0xFF800000> : vector<16xf32>
    %28 = vector.multi_reduction <maximumf>, %27, %cst_18 [1] : vector<16x128xf32> to vector<16xf32>
    %29 = vector.shape_cast %28 : vector<16xf32> to vector<16x1xf32>
    %30 = vector.broadcast %29 : vector<16x1xf32> to vector<16x128xf32>
    %31 = arith.subf %27, %30 : vector<16x128xf32>
    %32 = math.exp %31 : vector<16x128xf32>
    %cst_19 = arith.constant dense<0.000000e+00> : vector<16xf32>
    %33 = vector.multi_reduction <add>, %32, %cst_19 [1] : vector<16x128xf32> to vector<16xf32>
    %34 = vector.shape_cast %33 : vector<16xf32> to vector<16x1xf32>
    %35 = math.log %34 : vector<16x1xf32>
    %36 = vector.broadcast %35 : vector<16x1xf32> to vector<16x128xf32>
    %37 = arith.subf %31, %36 : vector<16x128xf32>
    %cst_20 = arith.constant 0.000000e+00 : f32
    %38 = vector.broadcast %cst_20 : f32 to vector<16x128xf32>
    %39 = arith.select %25, %37, %38 : vector<16x128xi1>, vector<16x128xf32>
    %40 = arith.truncf %39 : vector<16x128xf32> to vector<16x128xbf16>
    %c0_21 = arith.constant 0 : index
    %c0_22 = arith.constant 0 : index
    %41 = vector.load %arg8[%c0_21, %c0_22] : memref<16x128xbf16, #tpu.memory_space<vmem>>, vector<16x128xbf16>
    tpu.vector_store %arg8[%c0_21, %c0_22], %40 {strides = array<i32>} : memref<16x128xbf16, #tpu.memory_space<vmem>>, vector<16x128xbf16>,
    return
  }
  func.func @transform_0(%arg0: i32) -> (i32, i32) {
    %c0_i32 = arith.constant 0 : i32
    %c0_i32_0 = arith.constant 0 : i32
    return %arg0, %c0_i32 : i32, i32
  }
  func.func @transform_1(%arg0: i32) -> (i32, i32) {
    %c0_i32 = arith.constant 0 : i32
    %c0_i32_0 = arith.constant 0 : i32
    %c0_i32_1 = arith.constant 0 : i32
    return %c0_i32, %c0_i32_0 : i32, i32
  }
  func.func @transform_2(%arg0: i32) -> (i32, i32) {
    %c0_i32 = arith.constant 0 : i32
    %c0_i32_0 = arith.constant 0 : i32
    %c0_i32_1 = arith.constant 0 : i32
    return %c0_i32, %c0_i32_0 : i32, i32
  }
  func.func @transform_3(%arg0: i32) -> (i32, i32) {
    %c0_i32 = arith.constant 0 : i32
    %c0_i32_0 = arith.constant 0 : i32
    %c0_i32_1 = arith.constant 0 : i32
    return %c0_i32, %c0_i32_0 : i32, i32
  }
  func.func @transform_4(%arg0: i32) -> (i32, i32) {
    %c0_i32 = arith.constant 0 : i32
    %c0_i32_0 = arith.constant 0 : i32
    %c0_i32_1 = arith.constant 0 : i32
    return %c0_i32, %c0_i32_0 : i32, i32
  }
  func.func @transform_5(%arg0: i32) -> (i32, i32) {
    %c0_i32 = arith.constant 0 : i32
    %c0_i32_0 = arith.constant 0 : i32
    %c0_i32_1 = arith.constant 0 : i32
    return %c0_i32, %c0_i32_0 : i32, i32
  }
  func.func @transform_6(%arg0: i32) -> (i32, i32) {
    %c0_i32 = arith.constant 0 : i32
    %c0_i32_0 = arith.constant 0 : i32
    %c0_i32_1 = arith.constant 0 : i32
    return %c0_i32, %c0_i32_0 : i32, i32
  }
  func.func @transform_7(%arg0: i32) -> (i32, i32) {
    %c0_i32 = arith.constant 0 : i32
    %c0_i32_0 = arith.constant 0 : i32
    return %arg0, %c0_i32 : i32, i32
  }
}

</mosaic_0001>

<bundles_post_ra>
// kernel: mlp_forward.1
= control target key start
LH: loop header
LB: loop body
LE: loop exit
PB: predicated region body
PF: predicated region fallthrough
CT: control target
= control target key end

     0   :  { %v1171_v43 = vmov 0.0   ;;  %vm1172_vm0 = vmmov 0   ;;  %vm447_vm1 = vcmask 130048   ;;  %s1489_s1 = inlined_call_operand.vmem [shape: bf16[784,128], index: 1, kind: input, shape index: {}]   ;;  %s1490_s0 = inlined_call_operand.vmem [shape: f32[16,784], index: 0, kind: input, shape index: {}]   ;;  %s1491_s3 = inlined_call_operand.vmem [shape: bf16[128,128], index: 3, kind: input, shape index: {}]   ;;  %s1492_s5 = inlined_call_operand.vmem [shape: bf16[128,128], index: 5, kind: input, shape index: {}]   ;;  %s1493_s2 = inlined_call_operand.vmem [shape: f32[1,128], index: 2, kind: input, shape index: {}]   ;;  %s1494_s4 = inlined_call_operand.vmem [shape: f32[1,128], index: 4, kind: input, shape index: {}]   ;;  %s1495_s6 = inlined_call_operand.vmem [shape: f32[1,128], index: 6, kind: input, shape index: {}]   ;;  %s1496_s7 = inlined_call_operand.vmem [shape: bf16[16,128], index: 7, kind: output, shape index: {}]  }
   0x1   :  { %v1098_v0 = vld [vmem:[%s1489_s1 + $0x78] sm:$0xff]   ;;  %v1102_v4 = vld [vmem:[%s1489_s1 + $0x70] sm:$0xff]   ;;  %v1106_v8 = vld [vmem:[%s1489_s1 + $0x68] sm:$0xff]  }
   0x2   :  { %v1099_v1 = vld [vmem:[%s1489_s1 + $0x38] sm:$0xff]   ;;  %964 = vmatprep.subr.bf16.mxu0 %v1098_v0  ;;  %v1103_v5 = vld [vmem:[%s1489_s1 + $0x30] sm:$0xff]   ;;  %v1107_v9 = vld [vmem:[%s1489_s1 + $0x28] sm:$0xff]  }
   0x3   :  { %v1100_v2 = vld [vmem:[%s1489_s1 + $0xf8] sm:$0xff]   ;;  %965 = vmatpush3.bf16.msra.mxu0 %v1099_v1  ;;  %v1104_v6 = vld [vmem:[%s1489_s1 + $0xf0] sm:$0xff]   ;;  %v1108_v10 = vld [vmem:[%s1489_s1 + $0xe8] sm:$0xff]  }
   0x4   :  { %v1101_v3 = vld [vmem:[%s1489_s1 + $0xb8] sm:$0xff]   ;;  %986 = vmatprep.subr.bf16.mxu1 %v1100_v2  ;;  %966 = vmatprep.subr.bf16.mxu0 %v1102_v4  ;;  %v1105_v7 = vld [vmem:[%s1489_s1 + $0xb0] sm:$0xff]   ;;  %v1109_v11 = vld [vmem:[%s1489_s1 + $0xa8] sm:$0xff]  }
   0x5   :  { %987 = vmatpush3.bf16.msra.mxu1 %v1101_v3  ;;  %v1110_v12 = vld [vmem:[%s1489_s1 + $0x60] sm:$0xff]   ;;  %v1114_v16 = vld [vmem:[%s1489_s1 + $0x58] sm:$0xff]   ;;  %v1118_v20 = vld [vmem:[%s1489_s1 + $0x50] sm:$0xff]  }
   0x6   :  { %988 = vmatprep.subr.bf16.mxu1 %v1104_v6  ;;  %v1111_v13 = vld [vmem:[%s1489_s1 + $0x20] sm:$0xff]   ;;  %v1115_v17 = vld [vmem:[%s1489_s1 + $0x18] sm:$0xff]   ;;  %v1119_v21 = vld [vmem:[%s1489_s1 + $0x10] sm:$0xff]  }
   0x7   :  { %967 = vmatpush3.bf16.msra.mxu0 %v1103_v5  ;;  %v1112_v14 = vld [vmem:[%s1489_s1 + $0xe0] sm:$0xff]   ;;  %v1116_v18 = vld [vmem:[%s1489_s1 + $0xd8] sm:$0xff]   ;;  %v1120_v22 = vld [vmem:[%s1489_s1 + $0xd0] sm:$0xff]  }
   0x8   :  { %968 = vmatprep.subr.bf16.mxu0 %v1106_v8  ;;  %v1113_v15 = vld [vmem:[%s1489_s1 + $0xa0] sm:$0xff]   ;;  %v1117_v19 = vld [vmem:[%s1489_s1 + $0x98] sm:$0xff]   ;;  %v1121_v23 = vld [vmem:[%s1489_s1 + $0x90] sm:$0xff]  }
   0x9   :  { %989 = vmatpush3.bf16.msra.mxu1 %v1105_v7  ;;  %v1122_v24 = vld [vmem:[%s1489_s1 + $0x48] sm:$0xff]   ;;  %v1126_v28 = vld [vmem:[%s1489_s1 + $0x40] sm:$0xff]   ;;  %v34_v36 = vld [vmem:[%s1490_s0 + $0x38] sm:$0xff] }
   0xa   :  { %990 = vmatprep.subr.bf16.mxu1 %v1108_v10  ;;  %v1123_v25 = vld [vmem:[%s1489_s1 + $0x8] sm:$0xff]   ;;  %v1127_v29 = vld [vmem:[%s1489_s1] sm:$0xff]   ;;  %v1130_v38 = vld [vmem:[%s1489_s1 + $0x178] sm:$0xff]  }
   0xb   :  { %969 = vmatpush3.bf16.msra.mxu0 %v1107_v9  ;;  %v1124_v26 = vld [vmem:[%s1489_s1 + $0xc8] sm:$0xff]   ;;  %v1128_v30 = vld [vmem:[%s1489_s1 + $0xc0] sm:$0xff]   ;;  %v30_v39 = vld [vmem:[%s1490_s0 + $0x18] sm:$0xff] }
   0xc   :  { %970 = vmatprep.subr.bf16.mxu0 %v1110_v12  ;;  %v1125_v27 = vld [vmem:[%s1489_s1 + $0x88] sm:$0xff]   ;;  %v35_v32 = vld [vmem:[%s1490_s0 + $0x40] sm:$0xff]  ;;  %v37_v40 = vld [vmem:[%s1490_s0 + $0x50] sm:$0xff] }
   0xd   :  { %991 = vmatpush3.bf16.msra.mxu1 %v1109_v11  ;;  %v28_v31 = vld [vmem:[%s1490_s0 + $0x8] sm:$0xff]  ;;  %v1129_v34 = vld [vmem:[%s1489_s1 + $0x80] sm:$0xff]   ;;  %v44_v41 = vpack.c.bf16 %v37_v40, %v30_v39  ;;  %v1131_v42 = vld [vmem:[%s1489_s1 + $0x138] sm:$0xff]  }
   0xe   :  { %992 = vmatprep.subr.bf16.mxu1 %v1112_v14  ;;  %v42_v33 = vpack.c.bf16 %v35_v32, %v28_v31  ;;  %v27_v35 = vld [vmem:[%s1490_s0] sm:$0xff]  ;;  %v29_v44 = vld [vmem:[%s1490_s0 + $0x10] sm:$0xff]  ;;  %v36_v45 = vld [vmem:[%s1490_s0 + $0x48] sm:$0xff] }
   0xf   :  { %971 = vmatpush3.bf16.msra.mxu0 %v1111_v13  ;;  %v41_v37 = vpack.c.bf16 %v34_v36, %v27_v35  ;;  %524 = vmatprep.mubr.bf16.mxu1 %v44_v41  ;;  %v43_v46 = vpack.c.bf16 %v36_v45, %v29_v44  ;;  %v1132_v47 = vld [vmem:[%s1489_s1 + $0x170] sm:$0xff]   ;;  %v1134_v49 = vld [vmem:[%s1489_s1 + $0x168] sm:$0xff]   ;;  %v1136_v51 = vld [vmem:[%s1489_s1 + $0x160] sm:$0xff]  }
  0x10   :  { %972 = vmatprep.subr.bf16.mxu0 %v1114_v16  ;;  %483 = vmatprep.mubr.bf16.mxu0 %v42_v33  ;;  %v1133_v48 = vld [vmem:[%s1489_s1 + $0x130] sm:$0xff]   ;;  %v1135_v50 = vld [vmem:[%s1489_s1 + $0x128] sm:$0xff]   ;;  %v1137_v52 = vld [vmem:[%s1489_s1 + $0x120] sm:$0xff]  }
  0x11   :  { %993 = vmatpush3.bf16.msra.mxu1 %v1113_v15  ;;  %v1138_v53 = vld [vmem:[%s1489_s1 + $0x158] sm:$0xff]   ;;  %v1140_v55 = vld [vmem:[%s1489_s1 + $0x150] sm:$0xff]   ;;  %v1146_v56 = vld [vmem:[%s1489_s1 + $0x180] sm:$0xff]  }
  0x12   :  { %994 = vmatprep.subr.bf16.mxu1 %v1116_v18  ;;  %v1139_v54 = vld [vmem:[%s1489_s1 + $0x118] sm:$0xff]   ;;  %v32_v57 = vld [vmem:[%s1490_s0 + $0x28] sm:$0xff]  ;;  %v39_v58 = vld [vmem:[%s1490_s0 + $0x60] sm:$0xff] }
  0x13   :  { %973 = vmatpush3.bf16.msra.mxu0 %v1115_v17  ;;  %v1141_v59 = vld [vmem:[%s1489_s1 + $0x110] sm:$0xff]   ;;  %v46_v60 = vpack.c.bf16 %v39_v58, %v32_v57  ;;  %v40_v62 = vld [vmem:[%s1490_s0 + $0x68] sm:$0xff]  ;;  %v1144_v2 = vld [vmem:[%s1489_s1 + $0x140] sm:$0xff]  }
  0x14   :  { %974 = vmatprep.subr.bf16.mxu0 %v1118_v20  ;;  %v33_v61 = vld [vmem:[%s1490_s0 + $0x30] sm:$0xff]  ;;  %v1142_v63 = vld [vmem:[%s1489_s1 + $0x148] sm:$0xff]   ;;  %v1145_v3 = vld [vmem:[%s1489_s1 + $0x100] sm:$0xff]  }
  0x15   :  { %995 = vmatpush3.bf16.msra.mxu1 %v1117_v19  ;;  %v47_v0 = vpack.c.bf16 %v40_v62, %v33_v61  ;;  %v1143_v1 = vld [vmem:[%s1489_s1 + $0x108] sm:$0xff]   ;;  %v31_v4 = vld [vmem:[%s1490_s0 + $0x20] sm:$0xff]  ;;  %v38_v5 = vld [vmem:[%s1490_s0 + $0x58] sm:$0xff] }
  0x16   :  { %996 = vmatprep.subr.bf16.mxu1 %v1120_v22  ;;  %v45_v6 = vpack.c.bf16 %v38_v5, %v31_v4  ;;  %v1147_v7 = vld [vmem:[%s1491_s3 + $0x38] sm:$0xff]   ;;  %v1148_v8 = vld [vmem:[%s1491_s3 + $0x30] sm:$0xff]   ;;  %v1149_v9 = vld [vmem:[%s1491_s3 + $0x28] sm:$0xff]  }
  0x17   :  { %975 = vmatpush3.bf16.msra.mxu0 %v1119_v21  ;;  %v1150_v10 = vld [vmem:[%s1491_s3 + $0x20] sm:$0xff]   ;;  %v1151_v11 = vld [vmem:[%s1491_s3 + $0x18] sm:$0xff]   ;;  %v1152_v12 = vld [vmem:[%s1491_s3 + $0x10] sm:$0xff]  }
  0x18   :  { %976 = vmatprep.subr.bf16.mxu0 %v1122_v24  ;;  %v1153_v13 = vld [vmem:[%s1491_s3 + $0x8] sm:$0xff]   ;;  %v1154_v14 = vld [vmem:[%s1491_s3] sm:$0xff]   ;;  %v1155_v15 = vld [vmem:[%s1492_s5 + $0x38] sm:$0xff]  }
  0x19   :  { %997 = vmatpush3.bf16.msra.mxu1 %v1121_v23  ;;  %v1156_v16 = vld [vmem:[%s1492_s5 + $0x30] sm:$0xff]   ;;  %v1157_v17 = vld [vmem:[%s1492_s5 + $0x28] sm:$0xff]   ;;  %v1158_v18 = vld [vmem:[%s1492_s5 + $0x20] sm:$0xff]  }
  0x1a   :  { %998 = vmatprep.subr.bf16.mxu1 %v1124_v26  ;;  %v1159_v19 = vld [vmem:[%s1492_s5 + $0x18] sm:$0xff]   ;;  %v886_v32 = vld [vmem:[%s1493_s2] ss:$0 sm:$0xff] }
  0x1b   :  { %977 = vmatpush3.bf16.msra.mxu0 %v1123_v25  ;;  %v1162_v57 = vld [vmem:[%s1492_s5] sm:$0xff]  }
  0x1c   :  { %978 = vmatprep.subr.bf16.mxu0 %v1126_v28  ;;  %v937_v58 = vld [vmem:[%s1494_s4] ss:$0 sm:$0xff] }
  0x1d   :  { %999 = vmatpush3.bf16.msra.mxu1 %v1125_v27  ;;  %v946_v5 = vld [vmem:[%s1495_s6] ss:$0 sm:$0xff] }
  0x1e   :  { %1000 = vmatprep.subr.bf16.mxu1 %v1128_v30 }
  0x1f   :  { %979 = vmatpush3.bf16.msra.mxu0 %v1127_v29 }
  0x20   :  { %1008 = vmatprep.subr.bf16.mxu0 %v1130_v38 }
  0x21   :  { %1001 = vmatpush3.bf16.msra.mxu1 %v1129_v34 }
  0x22   :  { %1050 = vmatprep.subr.bf16.mxu1 %v1171_v43  ;;  %484 = vmatmul.mubr.bf16.vlgmr.msra.gmra.mxu0 %v41_v37 }
  0x23   :  { %1009 = vmatpush3.bf16.msra.mxu0 %v1131_v42  ;;  %565 = vmatprep.mubr.bf16.mxu0 %v46_v60 }
  0x24   :  { %525 = vmatmul.mubr.bf16.vlgmr.msra.gmra.mxu1 %v43_v46  ;;  %1010 = vmatprep.subr.bf16.mxu0 %v1132_v47 }
  0x25   :  { %1052 = vmatprep.mubr.msk.bf16.mxu1 %vm1172_vm0, %v1171_v43  ;;  %1051 = vmatpush3.bf16.msra.mxu1 %v1146_v56  ;;  %v1161_v56 = vld [vmem:[%s1492_s5 + $0x8] sm:$0xff]  }
  0x26   :  { %1056 = vmatprep.subr.bf16.mxu1 %v1171_v43 }
  0x27   :  { %1011 = vmatpush3.bf16.msra.mxu0 %v1133_v48 }
  0x28   :  { %1012 = vmatprep.subr.bf16.mxu0 %v1134_v49 }
  0x2b   :  { %1013 = vmatpush3.bf16.msra.mxu0 %v1135_v50 }
  0x2c   :  { %1014 = vmatprep.subr.bf16.mxu0 %v1136_v51  ;;  %1053 = vmatmul.mubr.msk.bf16.vlgmr.msra.gmra.mxu1 %vm447_vm1, %v47_v0 }
  0x2d   :  { %1072 = vmatprep.mubr.msk.bf16.mxu1 %vm1172_vm0, %v1171_v43  ;;  %1057 = vmatpush3.bf16.msra.mxu1 %v1147_v7 }
  0x2e   :  { %1058 = vmatprep.subr.bf16.mxu1 %v1171_v43 }
  0x2f   :  { %1015 = vmatpush3.bf16.msra.mxu0 %v1137_v52 }
  0x30   :  { %1016 = vmatprep.subr.bf16.mxu0 %v1138_v53 }
  0x31   :  { %1059 = vmatpush3.bf16.msra.mxu1 %v1148_v8 }
  0x32   :  { %1060 = vmatprep.subr.bf16.mxu1 %v1171_v43 }
  0x33   :  { %1017 = vmatpush3.bf16.msra.mxu0 %v1139_v54 }
  0x34   :  { %1018 = vmatprep.subr.bf16.mxu0 %v1140_v55  ;;  %v1160_v55 = vld [vmem:[%s1492_s5 + $0x10] sm:$0xff]  }
  0x35   :  { %1061 = vmatpush3.bf16.msra.mxu1 %v1149_v9 }
  0x36   :  { %1062 = vmatprep.subr.bf16.mxu1 %v1171_v43 }
  0x37   :  { %1019 = vmatpush3.bf16.msra.mxu0 %v1141_v59 }
  0x38   :  { %1020 = vmatprep.subr.bf16.mxu0 %v1142_v63 }
  0x39   :  { %1063 = vmatpush3.bf16.msra.mxu1 %v1150_v10 }
  0x3a   :  { %1064 = vmatprep.subr.bf16.mxu1 %v1171_v43 }
  0x3b   :  { %1021 = vmatpush3.bf16.msra.mxu0 %v1143_v1 }
  0x3c   :  { %1022 = vmatprep.subr.bf16.mxu0 %v1144_v2 }
  0x3d   :  { %1065 = vmatpush3.bf16.msra.mxu1 %v1151_v11 }
  0x3e   :  { %1066 = vmatprep.subr.bf16.mxu1 %v1171_v43 }
  0x3f   :  { %1023 = vmatpush3.bf16.msra.mxu0 %v1145_v3 }
  0x40   :  { %1076 = vmatprep.subr.bf16.mxu0 %v1171_v43 }
  0x41   :  { %1067 = vmatpush3.bf16.msra.mxu1 %v1152_v12 }
  0x42   :  { %566 = vmatmul.mubr.bf16.vlgmr.msra.gmra.mxu0 %v45_v6  ;;  %1068 = vmatprep.subr.bf16.mxu1 %v1171_v43 }
  0x43   :  { %1092 = vmatprep.mubr.msk.bf16.mxu0 %vm1172_vm0, %v1171_v43  ;;  %1077 = vmatpush3.bf16.msra.mxu0 %v1155_v15 }
  0x44   :  { %1078 = vmatprep.subr.bf16.mxu0 %v1171_v43 }
  0x45   :  { %1069 = vmatpush3.bf16.msra.mxu1 %v1153_v13 }
  0x46   :  { %1070 = vmatprep.subr.bf16.mxu1 %v1171_v43 }
  0x47   :  { %1079 = vmatpush3.bf16.msra.mxu0 %v1156_v16 }
  0x48   :  { %1080 = vmatprep.subr.bf16.mxu0 %v1171_v43 }
  0x49   :  { %1071 = vmatpush3.bf16.msra.mxu1 %v1154_v14 }
  0x4b   :  { %1081 = vmatpush3.bf16.msra.mxu0 %v1157_v17 }
  0x4c   :  { %1082 = vmatprep.subr.bf16.mxu0 %v1171_v43 }
  0x4f   :  { %1083 = vmatpush3.bf16.msra.mxu0 %v1158_v18 }
  0x50   :  { %1084 = vmatprep.subr.bf16.mxu0 %v1171_v43 }
  0x53   :  { %1085 = vmatpush3.bf16.msra.mxu0 %v1159_v19 }
  0x54   :  { %1086 = vmatprep.subr.bf16.mxu0 %v1171_v43 }
  0x57   :  { %1087 = vmatpush3.bf16.msra.mxu0 %v1160_v55 }
  0x58   :  { %1088 = vmatprep.subr.bf16.mxu0 %v1171_v43 }
  0x5b   :  { %1089 = vmatpush3.bf16.msra.mxu0 %v1161_v56 }
  0x5c   :  { %1090 = vmatprep.subr.bf16.mxu0 %v1171_v43  ;;  %v845_v43 = vlaneseq }
  0x5e   :  { %v846_v4 = vand.u32 127, %v845_v43 }
  0x5f   :  { %1091 = vmatpush3.bf16.msra.mxu0 %v1162_v57 }
  0x60   :  { %vm847_vm2 = vcmp.lt.s32.totalorder %v846_v4, 10 }
  0xe2   :  { %v980_v23 = vpop.f32.mrf.mxu0 }
  0xe4   :  { %v1002_v20 = vpop.f32.mrf.mxu1  ;;  %v981_v25 = vpop.f32.mrf.mxu0 }
  0xe5   :  { %v982_v31 = vadd.f32 %v981_v25, %v980_v23 }
  0xe6   :  { %v1003_v21 = vpop.f32.mrf.mxu1  ;;  %v983_v28 = vpop.f32.mrf.mxu0 }
  0xe7   :  { %v486_v34 = vadd.f32 %v982_v31, %v886_v32  ;;  %v1004_v35 = vadd.f32 %v1003_v21, %v1002_v20 }
  0xe8   :  { %v1005_v22 = vpop.f32.mrf.mxu1  ;;  %v984_v33 = vpop.f32.mrf.mxu0 }
  0xe9   :  { %v985_v36 = vadd.f32 %v984_v33, %v983_v28  ;;  %v527_v39 = vadd.f32 %v1004_v35, %v486_v34 }
  0xea   :  { %v1006_v24 = vpop.f32.mrf.mxu1 }
  0xeb   :  { %v489_v40 = vadd.f32 %v985_v36, %v886_v32  ;;  %v1007_v41 = vadd.f32 %v1006_v24, %v1005_v22 }
  0xec   :  { %v608_v26 = vpop.f32.mrf.mxu1 }
  0xed   :  { %v530_v47 = vadd.f32 %v1007_v41, %v489_v40 }
  0xee   :  { %v1054_v27 = vpop.f32.mrf.mxu1 }
  0xf0   :  { %v611_v29 = vpop.f32.mrf.mxu1 }
  0xf2   :  { %v1055_v30 = vpop.f32.mrf.mxu1 }
 0x102   :  { %v1024_v37 = vpop.f32.mrf.mxu0 }
 0x104   :  { %v1025_v38 = vpop.f32.mrf.mxu0 }
 0x105   :  { %v1026_v42 = vadd.f32 %v1025_v38, %v1024_v37 }
 0x106   :  { %v1027_v44 = vpop.f32.mrf.mxu0 }
 0x107   :  { %v568_v45 = vadd.f32 %v1026_v42, %v527_v39 }
 0x108   :  { %v1028_v46 = vpop.f32.mrf.mxu0 }
 0x109   :  { %v1029_v48 = vadd.f32 %v1028_v46, %v1027_v44  ;;  %v609_v49 = vadd.f32 %v608_v26, %v568_v45 }
 0x10b   :  { %v571_v50 = vadd.f32 %v1029_v48, %v530_v47  ;;  %v615_v52 = vmax.f32 %v609_v49, 0.0 }
 0x10d   :  { %v612_v51 = vadd.f32 %v611_v29, %v571_v50 }
 0x10f   :  { %v616_v53 = vmax.f32 %v612_v51, 0.0 }
 0x111   :  { %v617_v54 = vpack.c.bf16 %v616_v53, %v615_v52 }
 0x113   :  { %1073 = vmatmul.mubr.bf16.vlgmr.msra.gmra.mxu1 %v617_v54 }
 0x1d3   :  { %v723_v59 = vpop.f32.mrf.mxu1 }
 0x1d4   :  { %v724_v61 = vadd.f32 %v937_v58, %v723_v59 }
 0x1d5   :  { %v1074_v60 = vpop.f32.mrf.mxu1 }
 0x1d6   :  { %v730_v1 = vmax.f32 %v724_v61, 0.0 }
 0x1d7   :  { %v726_v62 = vpop.f32.mrf.mxu1 }
 0x1d8   :  { %v727_v63 = vadd.f32 %v937_v58, %v726_v62 }
 0x1d9   :  { %v1075_v0 = vpop.f32.mrf.mxu1 }
 0x1da   :  { %v731_v2 = vmax.f32 %v727_v63, 0.0 }
 0x1dc   :  { %v732_v3 = vpack.c.bf16 %v731_v2, %v730_v1 }
 0x1de   :  { %1093 = vmatmul.mubr.bf16.vlgmr.msra.gmra.mxu0 %v732_v3 }
 0x29e   :  { %v838_v6 = vpop.f32.mrf.mxu0 }
 0x29f   :  { %v839_v7 = vadd.f32 %v946_v5, %v838_v6 }
 0x2a0   :  { %v1094_v8 = vpop.f32.mrf.mxu0 }
 0x2a1   :  { %v848_v9 = vsel %vm847_vm2, %v839_v7, -1e+30 }
 0x2a2   :  { %850 = vmax.xlane.f32.xlu0 %v848_v9  ;;  %v841_v10 = vpop.f32.mrf.mxu0 }
 0x2a3   :  { %v842_v11 = vadd.f32 %v946_v5, %v841_v10 }
 0x2a4   :  { %v1095_v12 = vpop.f32.mrf.mxu0 }
 0x2a5   :  { %v849_v13 = vsel %vm847_vm2, %v842_v11, -1e+30 }
 0x2a6   :  { %852 = vmax.xlane.f32.xlu0 %v849_v13 }
 0x32b   :  { %v851_v14 = vpop.xlane.xlu0 %850 }
 0x32c   :  { %v854_v15 = vsub.f32 %v848_v9, %v851_v14 }
 0x32e   :  { %v856_v16 = vmul.f32 1.442695, %v854_v15 }
 0x32f   :  { %v853_v17 = vpop.xlane.xlu0 %852 }
 0x330   :  { %v855_v18 = vsub.f32 %v849_v13, %v853_v17  ;;  %1163 = vpow2.f32 %v856_v16 }
 0x332   :  { %v858_v19 = vmul.f32 1.442695, %v855_v18 }
 0x334   :  { %1165 = vpow2.f32 %v858_v19 }
 0x33d   :  { %v1164_v20 = vpop.eup %1163 }
 0x33e   :  { %860 = vadd.xlane.f32.xlu1 %v1164_v20 }
 0x341   :  { %v1166_v21 = vpop.eup %1165 }
 0x342   :  { %862 = vadd.xlane.f32.xlu1 %v1166_v21 }
 0x3c7   :  { %v861_v22 = vpop.xlane.xlu1 %860 }
 0x3c8   :  { %1167 = vlog2.f32 %v861_v22 }
 0x3cb   :  { %v863_v23 = vpop.xlane.xlu1 %862 }
 0x3cc   :  { %1169 = vlog2.f32 %v863_v23 }
 0x3d5   :  { %v1168_v24 = vpop.eup %1167 }
 0x3d6   :  { %v865_v25 = vmul.f32 0.6931472, %v1168_v24 }
 0x3d8   :  { %v868_v27 = vsub.f32 %v854_v15, %v865_v25 }
 0x3d9   :  { %v1170_v26 = vpop.eup %1169 }
 0x3da   :  { %v867_v28 = vmul.f32 0.6931472, %v1170_v26  ;;  %v870_v30 = vsel %vm847_vm2, %v868_v27, 0.0 }
 0x3dc   :  { %v869_v29 = vsub.f32 %v855_v18, %v867_v28 }
 0x3de   :  { %v871_v31 = vsel %vm847_vm2, %v869_v29, 0.0 }
 0x3df   :  { %v962_v32 = vpack.c.bf16 %v871_v31, %v870_v30 }
 0x3e1   :  { %963 = vst [vmem:[%s1496_s7] sm:$0xff] %v962_v32  }

</bundles_post_ra>
